<compile_context>
chip_gen: v5e
topology: v5e:2x2
jax: 0.10.0
libtpu: 0.0.40
codegen_flags: <defaults>
</compile_context>

<pallas_src>
import functools

import jax
import jax.numpy as jnp
from jax import lax
from jax.experimental import pallas as pl
from jax.experimental.pallas import tpu as pltpu


_PAD = 8  # sublane-aligned number of zero rows above the activation in the scratch


# ----------------------------- kernel ----------------------------------------


def _conv3x3_rowslab(buf_ref, x2, wk_ref, stride, oh):
    """3x3 conv (padding=1, stride `stride`) in row-slab layout.

    x2:      (rows_in, Win*Cin) f32 activation slab (one image).
    buf_ref: VMEM scratch, (_PAD + rows_in + stride, Win*Cin); used to realize the
             H-direction zero halo with aligned stores only.
    wk_ref:  (3, Win*Cin, Ow*Cout) block-Toeplitz weight slabs; tap kh consumes
             input row r*stride + kh - 1. kw taps, W-padding and the W-stride are
             folded into the slabs on the host.
    Returns  (oh, Ow*Cout) f32.
    """
    rows_in, k = x2.shape
    n_out = wk_ref.shape[-1]

    buf_ref[...] = jnp.zeros(buf_ref.shape, jnp.float32)
    buf_ref[pl.ds(_PAD, rows_in), :] = x2            # aligned (offset 8) store
    xb = buf_ref[...]

    acc = jnp.zeros((oh, n_out), jnp.float32)
    for kh in range(3):                              # 3 MXU matmuls, K = Win*Cin
        start = _PAD + kh - 1
        rows = lax.slice(xb, (start, 0),
                         (start + stride * (oh - 1) + 1, k), (stride, 1))
        acc = acc + jnp.dot(rows, wk_ref[kh],
                            preferred_element_type=jnp.float32)
    return acc


def _residual_block_kernel(x_ref, w1_ref, s1_ref, b1_ref,
                           w2_ref, s2_ref, b2_ref, *rest,
                           stride, oh, has_proj):
    if has_proj:
        ws_ref, ss_ref, bs_ref, o_ref, xbuf_ref, hbuf_ref = rest
    else:
        o_ref, xbuf_ref, hbuf_ref = rest

    _, hh, k_in = x_ref.shape
    x2 = x_ref[...].reshape(hh, k_in).astype(jnp.float32)      # (H, W*Cin)

    # conv1 (3x3, stride) + folded BN1 + ReLU, kept on-chip.
    h = _conv3x3_rowslab(xbuf_ref, x2, w1_ref, stride, oh)
    h = jnp.maximum(h * s1_ref[...] + b1_ref[...], 0.0)

    # shortcut, kept on-chip (stride handled in-kernel, no HBM round trip).
    if has_proj:
        xs = lax.slice(x2, (0, 0),
                       (stride * (oh - 1) + 1, k_in), (stride, 1))
        sc = jnp.dot(xs, ws_ref[...], preferred_element_type=jnp.float32)
        sc = sc * ss_ref[...] + bs_ref[...]
    else:
        sc = x2                                                 # identity

    # conv2 (3x3, stride 1) + folded BN2 + residual add + ReLU.
    out = _conv3x3_rowslab(hbuf_ref, h, w2_ref, 1, oh)
    out = out * s2_ref[...] + b2_ref[...]
    out = jnp.maximum(out + sc, 0.0)
    o_ref[...] = out.reshape(o_ref.shape).astype(o_ref.dtype)   # lane-dense store


# ----------------------------- wrapper (glue) ---------------------------------


def residual_block_fused(x_nhwc, fused, *, stride=1):
    """Fused ResidualBlock forward. x_nhwc: (N, H, W, Cin). Returns (N, Oh, Ow, Cout)."""
    n, hh, ww, cin = x_nhwc.shape
    cout = fused["cout"]
    oh = (hh - 1) // stride + 1
    ow = (ww - 1) // stride + 1
    n1 = ow * cout
    k_in = ww * cin
    has_proj = "ws_slab" in fused
    if not has_proj:
        assert stride == 1 and cin == cout, "identity shortcut needs stride=1, cin=cout"

    x2 = x_nhwc.reshape(n, hh, k_in)   # contiguous: fuse W and C on the lane axis

    in_specs = [
        pl.BlockSpec((1, hh, k_in), lambda i: (i, 0, 0)),
        pl.BlockSpec((3, k_in, n1), lambda i: (0, 0, 0)),
        pl.BlockSpec((1, n1), lambda i: (0, 0)),
        pl.BlockSpec((1, n1), lambda i: (0, 0)),
        pl.BlockSpec((3, n1, n1), lambda i: (0, 0, 0)),
        pl.BlockSpec((1, n1), lambda i: (0, 0)),
        pl.BlockSpec((1, n1), lambda i: (0, 0)),
    ]
    args = [x2, fused["w1_slab"], fused["s1"], fused["b1"],
            fused["w2_slab"], fused["s2"], fused["b2"]]
    if has_proj:
        in_specs += [pl.BlockSpec((k_in, n1), lambda i: (0, 0)),
                     pl.BlockSpec((1, n1), lambda i: (0, 0)),
                     pl.BlockSpec((1, n1), lambda i: (0, 0))]
        args += [fused["ws_slab"], fused["ss"], fused["bs"]]

    kernel = functools.partial(_residual_block_kernel,
                               stride=stride, oh=oh, has_proj=has_proj)

    out2 = pl.pallas_call(
        kernel,
        out_shape=jax.ShapeDtypeStruct((n, oh, n1), x_nhwc.dtype),
        grid=(n,),
        in_specs=in_specs,
        out_specs=pl.BlockSpec((1, oh, n1), lambda i: (i, 0, 0)),
        scratch_shapes=[pltpu.VMEM((_PAD + hh + stride, k_in), jnp.float32),
                        pltpu.VMEM((_PAD + oh + 1, n1), jnp.float32)],
        compiler_params=pltpu.CompilerParams(
            dimension_semantics=("parallel",)),
    )(*args)
    return out2.reshape(n, oh, ow, cout)


def residual_block_forward(x_nchw, fused, *, stride=1):
    """NCHW boundary for PyTorch parity; use residual_block_fused when stacking."""
    x = jnp.transpose(x_nchw, (0, 2, 3, 1))
    y = residual_block_fused(x, fused, stride=stride)
    return jnp.transpose(y, (0, 3, 1, 2))


# --------------------- host-side parameter preparation ------------------------


def _fold_bn(gamma, beta, mean, var, eps=1e-5):
    scale = gamma * lax.rsqrt(var + eps)
    bias = beta - mean * scale
    return scale, bias


def _conv3x3_to_slabs(w_hwio, width, stride):
    """(3,3,Cin,Cout) HWIO -> (3, width*Cin, ow*Cout) block-Toeplitz slabs."""
    _, _, cin, cout = w_hwio.shape
    ow = (width - 1) // stride + 1
    j = jnp.arange(width)[:, None]
    c = jnp.arange(ow)[None, :]
    slabs = []
    for kh in range(3):
        slab = jnp.zeros((width * cin, ow * cout), w_hwio.dtype)
        for kw in range(3):
            sel = (j == c * stride + kw - 1).astype(w_hwio.dtype)   # W-pad + stride
            slab = slab + jnp.kron(sel, w_hwio[kh, kw])
        slabs.append(slab)
    return jnp.stack(slabs, axis=0)


def _conv1x1_to_slab(w_io, width, stride):
    cin, cout = w_io.shape
    ow = (width - 1) // stride + 1
    j = jnp.arange(width)[:, None]
    c = jnp.arange(ow)[None, :]
    sel = (j == c * stride).astype(w_io.dtype)
    return jnp.kron(sel, w_io)


def prepare_fused_params(raw, width, stride):
    """Fold eval-mode BN and build the row-slab weights (done once per model)."""
    cout = raw["w1"].shape[-1]
    ow = (width - 1) // stride + 1

    def tiled(v):
        return jnp.tile(v[None, :], (1, ow))

    p = {"cout": cout}
    p["w1_slab"] = _conv3x3_to_slabs(raw["w1"], width, stride)
    s1, b1 = _fold_bn(*raw["bn1"])
    p["s1"], p["b1"] = tiled(s1), tiled(b1)
    p["w2_slab"] = _conv3x3_to_slabs(raw["w2"], ow, 1)
    s2, b2 = _fold_bn(*raw["bn2"])
    p["s2"], p["b2"] = tiled(s2), tiled(b2)
    if "ws" in raw:
        p["ws_slab"] = _conv1x1_to_slab(raw["ws"], width, stride)
        ss, bs = _fold_bn(*raw["bns"])
        p["ss"], p["bs"] = tiled(ss), tiled(bs)
    return p


def init_raw_params(key, cin, cout, stride):
    ks = jax.random.split(key, 6)

    def conv_init(k, kh, kw, ci, co):
        fan = kh * kw * ci
        return jax.random.normal(k, (kh, kw, ci, co), jnp.float32) / (fan ** 0.5)

    def bn_init(k, c):
        kg, kb, km, kv = jax.random.split(k, 4)
        gamma = 1.0 + 0.1 * jax.random.normal(kg, (c,), jnp.float32)
        beta = 0.1 * jax.random.normal(kb, (c,), jnp.float32)
        mean = 0.05 * jax.random.normal(km, (c,), jnp.float32)
        var = jax.random.uniform(kv, (c,), jnp.float32, 0.5, 1.5)
        return (gamma, beta, mean, var)

    raw = {"w1": conv_init(ks[0], 3, 3, cin, cout), "bn1": bn_init(ks[1], cout),
           "w2": conv_init(ks[2], 3, 3, cout, cout), "bn2": bn_init(ks[3], cout)}
    if stride != 1 or cin != cout:
        raw["ws"] = conv_init(ks[4], 1, 1, cin, cout)[0, 0]
        raw["bns"] = bn_init(ks[5], cout)
    return raw


# --------------------------- pure-JAX reference --------------------------------


def reference_block(x_nchw, raw, *, stride=1):
    x = jnp.transpose(x_nchw, (0, 2, 3, 1)).astype(jnp.float32)

    def conv(x, w, s, pad):
        return lax.conv_general_dilated(
            x, w, (s, s), ((pad, pad), (pad, pad)),
            dimension_numbers=("NHWC", "HWIO", "NHWC"))

    s1, b1 = _fold_bn(*raw["bn1"])
    s2, b2 = _fold_bn(*raw["bn2"])
    h = jax.nn.relu(conv(x, raw["w1"], stride, 1) * s1 + b1)
    out = conv(h, raw["w2"], 1, 1) * s2 + b2
    if "ws" in raw:
        ss, bs = _fold_bn(*raw["bns"])
        sc = conv(x, raw["ws"][None, None], stride, 0) * ss + bs
    else:
        sc = x
    return jnp.transpose(jax.nn.relu(out + sc), (0, 3, 1, 2))


# ----------------------------------- main --------------------------------------


if __name__ == "__main__":
    configs = [
        ("projection, stride=1", 2, 4, 8, 16, 16, 1),
        ("projection, stride=2", 2, 4, 8, 16, 16, 2),
        ("identity,   stride=1", 2, 8, 8, 16, 16, 1),
    ]
    key = jax.random.PRNGKey(0)
    for name, N, Cin, Cout, H, W, stride in configs:
        key, kx, kp = jax.random.split(key, 3)
        x = jax.random.normal(kx, (N, Cin, H, W), jnp.float32)   # NCHW like PyTorch
        raw = init_raw_params(kp, Cin, Cout, stride)
        fused = prepare_fused_params(raw, W, stride)             # once per model

        out = residual_block_forward(x, fused, stride=stride)
        out = jax.block_until_ready(out)

        oh, ow = (H - 1) // stride + 1, (W - 1) // stride + 1
        assert out.shape == (N, Cout, oh, ow), (name, out.shape)

        ref = reference_block(x, raw, stride=stride)
        max_err = float(jnp.max(jnp.abs(out - ref)))
        assert max_err < 1e-3, f"{name}: mismatch vs reference: {max_err}"

    print("KERNEL_OK")
</pallas_src>

<mosaic_0001>
module attributes {stable_mosaic.version = 11 : i64} {
  func.func @_residual_block_kernel(%arg0: i32, %arg1: memref<1x16x64xf32, #tpu.memory_space<vmem>>, %arg2: memref<3x64x128xf32, #tpu.memory_space<vmem>>, %arg3: memref<1x128xf32, #tpu.memory_space<vmem>>, %arg4: memref<1x128xf32, #tpu.memory_space<vmem>>, %arg5: memref<3x128x128xf32, #tpu.memory_space<vmem>>, %arg6: memref<1x128xf32, #tpu.memory_space<vmem>>, %arg7: memref<1x128xf32, #tpu.memory_space<vmem>>, %arg8: memref<64x128xf32, #tpu.memory_space<vmem>>, %arg9: memref<1x128xf32, #tpu.memory_space<vmem>>, %arg10: memref<1x128xf32, #tpu.memory_space<vmem>>, %arg11: memref<1x16x128xf32, #tpu.memory_space<vmem>>, %arg12: memref<25x64xf32, #tpu.memory_space<vmem>>, %arg13: memref<25x128xf32, #tpu.memory_space<vmem>>) attributes {dimension_semantics = [#tpu.dimension_semantics<parallel>], iteration_bounds = array<i64: 2>, scalar_prefetch = 0 : i64, scratch_operands = 2 : i64, tpu.core_type = #tpu.core_type<tc>, window_params = [{transform_indices = @transform_0, window_bounds = array<i64: 1, 16, 64>}, {pipeline_mode = #tpu.pipeline_mode<synchronous>, transform_indices = @transform_1, window_bounds = array<i64: 3, 64, 128>}, {pipeline_mode = #tpu.pipeline_mode<synchronous>, transform_indices = @transform_2, window_bounds = array<i64: 1, 128>}, {pipeline_mode = #tpu.pipeline_mode<synchronous>, transform_indices = @transform_3, window_bounds = array<i64: 1, 128>}, {pipeline_mode = #tpu.pipeline_mode<synchronous>, transform_indices = @transform_4, window_bounds = array<i64: 3, 128, 128>}, {pipeline_mode = #tpu.pipeline_mode<synchronous>, transform_indices = @transform_5, window_bounds = array<i64: 1, 128>}, {pipeline_mode = #tpu.pipeline_mode<synchronous>, transform_indices = @transform_6, window_bounds = array<i64: 1, 128>}, {pipeline_mode = #tpu.pipeline_mode<synchronous>, transform_indices = @transform_7, window_bounds = array<i64: 64, 128>}, {pipeline_mode = #tpu.pipeline_mode<synchronous>, transform_indices = @transform_8, window_bounds = array<i64: 1, 128>}, {pipeline_mode = #tpu.pipeline_mode<synchronous>, transform_indices = @transform_9, window_bounds = array<i64: 1, 128>}, {transform_indices = @transform_10, window_bounds = array<i64: 1, 16, 128>}]} {
    %c0 = arith.constant 0 : index
    %c0_0 = arith.constant 0 : index
    %c0_1 = arith.constant 0 : index
    %0 = vector.load %arg1[%c0, %c0_0, %c0_1] : memref<1x16x64xf32, #tpu.memory_space<vmem>>, vector<1x16x64xf32>
    %1 = vector.shape_cast %0 : vector<1x16x64xf32> to vector<16x64xf32>
    %cst = arith.constant 0.000000e+00 : f32
    %2 = vector.broadcast %cst : f32 to vector<25x64xf32>
    %c0_2 = arith.constant 0 : index
    %c0_3 = arith.constant 0 : index
    %3 = vector.load %arg12[%c0_2, %c0_3] : memref<25x64xf32, #tpu.memory_space<vmem>>, vector<25x64xf32>
    tpu.vector_store %arg12[%c0_2, %c0_3], %2 {strides = array<i32>} : memref<25x64xf32, #tpu.memory_space<vmem>>, vector<25x64xf32>,
    %c8 = arith.constant 8 : index
    %c0_4 = arith.constant 0 : index
    %4 = vector.load %arg12[%c8, %c0_4] : memref<25x64xf32, #tpu.memory_space<vmem>>, vector<16x64xf32>
    tpu.vector_store %arg12[%c8, %c0_4], %1 {strides = array<i32>} : memref<25x64xf32, #tpu.memory_space<vmem>>, vector<16x64xf32>,
    %c0_5 = arith.constant 0 : index
    %c0_6 = arith.constant 0 : index
    %5 = vector.load %arg12[%c0_5, %c0_6] : memref<25x64xf32, #tpu.memory_space<vmem>>, vector<25x64xf32>
    %cst_7 = arith.constant 0.000000e+00 : f32
    %6 = vector.broadcast %cst_7 : f32 to vector<16x128xf32>
    %7 = vector.extract_strided_slice %5 {offsets = [7, 0], sizes = [16, 64], strides = [1, 1]} : vector<25x64xf32> to vector<16x64xf32>
    %c0_8 = arith.constant 0 : index
    %c0_9 = arith.constant 0 : index
    %c0_10 = arith.constant 0 : index
    %8 = vector.load %arg2[%c0_8, %c0_9, %c0_10] : memref<3x64x128xf32, #tpu.memory_space<vmem>>, vector<1x64x128xf32>
    %9 = vector.shape_cast %8 : vector<1x64x128xf32> to vector<64x128xf32>
    %cst_11 = arith.constant dense<0.000000e+00> : vector<16x128xf32>
    %10 = tpu.matmul %7, %9, %cst_11 {dimension_numbers = #tpu.dot_dimension_numbers<[1], [0], [0], [1], [0, 0, 1, 1], [], []>} : vector<16x64xf32>, vector<64x128xf32>, vector<16x128xf32> -> vector<16x128xf32>
    %11 = arith.addf %6, %10 : vector<16x128xf32>
    %12 = vector.extract_strided_slice %5 {offsets = [8, 0], sizes = [16, 64], strides = [1, 1]} : vector<25x64xf32> to vector<16x64xf32>
    %c1 = arith.constant 1 : index
    %c0_12 = arith.constant 0 : index
    %c0_13 = arith.constant 0 : index
    %13 = vector.load %arg2[%c1, %c0_12, %c0_13] : memref<3x64x128xf32, #tpu.memory_space<vmem>>, vector<1x64x128xf32>
    %14 = vector.shape_cast %13 : vector<1x64x128xf32> to vector<64x128xf32>
    %cst_14 = arith.constant dense<0.000000e+00> : vector<16x128xf32>
    %15 = tpu.matmul %12, %14, %cst_14 {dimension_numbers = #tpu.dot_dimension_numbers<[1], [0], [0], [1], [0, 0, 1, 1], [], []>} : vector<16x64xf32>, vector<64x128xf32>, vector<16x128xf32> -> vector<16x128xf32>
    %16 = arith.addf %11, %15 : vector<16x128xf32>
    %17 = vector.extract_strided_slice %5 {offsets = [9, 0], sizes = [16, 64], strides = [1, 1]} : vector<25x64xf32> to vector<16x64xf32>
    %c2 = arith.constant 2 : index
    %c0_15 = arith.constant 0 : index
    %c0_16 = arith.constant 0 : index
    %18 = vector.load %arg2[%c2, %c0_15, %c0_16] : memref<3x64x128xf32, #tpu.memory_space<vmem>>, vector<1x64x128xf32>
    %19 = vector.shape_cast %18 : vector<1x64x128xf32> to vector<64x128xf32>
    %cst_17 = arith.constant dense<0.000000e+00> : vector<16x128xf32>
    %20 = tpu.matmul %17, %19, %cst_17 {dimension_numbers = #tpu.dot_dimension_numbers<[1], [0], [0], [1], [0, 0, 1, 1], [], []>} : vector<16x64xf32>, vector<64x128xf32>, vector<16x128xf32> -> vector<16x128xf32>
    %21 = arith.addf %16, %20 : vector<16x128xf32>
    %c0_18 = arith.constant 0 : index
    %c0_19 = arith.constant 0 : index
    %22 = vector.load %arg3[%c0_18, %c0_19] : memref<1x128xf32, #tpu.memory_space<vmem>>, vector<1x128xf32>
    %23 = vector.broadcast %22 : vector<1x128xf32> to vector<16x128xf32>
    %24 = arith.mulf %21, %23 : vector<16x128xf32>
    %c0_20 = arith.constant 0 : index
    %c0_21 = arith.constant 0 : index
    %25 = vector.load %arg4[%c0_20, %c0_21] : memref<1x128xf32, #tpu.memory_space<vmem>>, vector<1x128xf32>
    %26 = vector.broadcast %25 : vector<1x128xf32> to vector<16x128xf32>
    %27 = arith.addf %24, %26 : vector<16x128xf32>
    %cst_22 = arith.constant 0.000000e+00 : f32
    %28 = vector.broadcast %cst_22 : f32 to vector<16x128xf32>
    %29 = arith.maximumf %27, %28 : vector<16x128xf32>
    %30 = vector.extract_strided_slice %1 {offsets = [0, 0], sizes = [16, 64], strides = [1, 1]} : vector<16x64xf32> to vector<16x64xf32>
    %c0_23 = arith.constant 0 : index
    %c0_24 = arith.constant 0 : index
    %31 = vector.load %arg8[%c0_23, %c0_24] : memref<64x128xf32, #tpu.memory_space<vmem>>, vector<64x128xf32>
    %cst_25 = arith.constant dense<0.000000e+00> : vector<16x128xf32>
    %32 = tpu.matmul %30, %31, %cst_25 {dimension_numbers = #tpu.dot_dimension_numbers<[1], [0], [0], [1], [0, 0, 1, 1], [], []>} : vector<16x64xf32>, vector<64x128xf32>, vector<16x128xf32> -> vector<16x128xf32>
    %c0_26 = arith.constant 0 : index
    %c0_27 = arith.constant 0 : index
    %33 = vector.load %arg9[%c0_26, %c0_27] : memref<1x128xf32, #tpu.memory_space<vmem>>, vector<1x128xf32>
    %34 = vector.broadcast %33 : vector<1x128xf32> to vector<16x128xf32>
    %35 = arith.mulf %32, %34 : vector<16x128xf32>
    %c0_28 = arith.constant 0 : index
    %c0_29 = arith.constant 0 : index
    %36 = vector.load %arg10[%c0_28, %c0_29] : memref<1x128xf32, #tpu.memory_space<vmem>>, vector<1x128xf32>
    %37 = vector.broadcast %36 : vector<1x128xf32> to vector<16x128xf32>
    %38 = arith.addf %35, %37 : vector<16x128xf32>
    %cst_30 = arith.constant 0.000000e+00 : f32
    %39 = vector.broadcast %cst_30 : f32 to vector<25x128xf32>
    %c0_31 = arith.constant 0 : index
    %c0_32 = arith.constant 0 : index
    %40 = vector.load %arg13[%c0_31, %c0_32] : memref<25x128xf32, #tpu.memory_space<vmem>>, vector<25x128xf32>
    tpu.vector_store %arg13[%c0_31, %c0_32], %39 {strides = array<i32>} : memref<25x128xf32, #tpu.memory_space<vmem>>, vector<25x128xf32>,
    %c8_33 = arith.constant 8 : index
    %c0_34 = arith.constant 0 : index
    %41 = vector.load %arg13[%c8_33, %c0_34] : memref<25x128xf32, #tpu.memory_space<vmem>>, vector<16x128xf32>
    tpu.vector_store %arg13[%c8_33, %c0_34], %29 {strides = array<i32>} : memref<25x128xf32, #tpu.memory_space<vmem>>, vector<16x128xf32>,
    %c0_35 = arith.constant 0 : index
    %c0_36 = arith.constant 0 : index
    %42 = vector.load %arg13[%c0_35, %c0_36] : memref<25x128xf32, #tpu.memory_space<vmem>>, vector<25x128xf32>
    %cst_37 = arith.constant 0.000000e+00 : f32
    %43 = vector.broadcast %cst_37 : f32 to vector<16x128xf32>
    %44 = vector.extract_strided_slice %42 {offsets = [7, 0], sizes = [16, 128], strides = [1, 1]} : vector<25x128xf32> to vector<16x128xf32>
    %c0_38 = arith.constant 0 : index
    %c0_39 = arith.constant 0 : index
    %c0_40 = arith.constant 0 : index
    %45 = vector.load %arg5[%c0_38, %c0_39, %c0_40] : memref<3x128x128xf32, #tpu.memory_space<vmem>>, vector<1x128x128xf32>
    %46 = vector.shape_cast %45 : vector<1x128x128xf32> to vector<128x128xf32>
    %cst_41 = arith.constant dense<0.000000e+00> : vector<16x128xf32>
    %47 = tpu.matmul %44, %46, %cst_41 {dimension_numbers = #tpu.dot_dimension_numbers<[1], [0], [0], [1], [0, 0, 1, 1], [], []>} : vector<16x128xf32>, vector<128x128xf32>, vector<16x128xf32> -> vector<16x128xf32>
    %48 = arith.addf %43, %47 : vector<16x128xf32>
    %49 = vector.extract_strided_slice %42 {offsets = [8, 0], sizes = [16, 128], strides = [1, 1]} : vector<25x128xf32> to vector<16x128xf32>
    %c1_42 = arith.constant 1 : index
    %c0_43 = arith.constant 0 : index
    %c0_44 = arith.constant 0 : index
    %50 = vector.load %arg5[%c1_42, %c0_43, %c0_44] : memref<3x128x128xf32, #tpu.memory_space<vmem>>, vector<1x128x128xf32>
    %51 = vector.shape_cast %50 : vector<1x128x128xf32> to vector<128x128xf32>
    %cst_45 = arith.constant dense<0.000000e+00> : vector<16x128xf32>
    %52 = tpu.matmul %49, %51, %cst_45 {dimension_numbers = #tpu.dot_dimension_numbers<[1], [0], [0], [1], [0, 0, 1, 1], [], []>} : vector<16x128xf32>, vector<128x128xf32>, vector<16x128xf32> -> vector<16x128xf32>
    %53 = arith.addf %48, %52 : vector<16x128xf32>
    %54 = vector.extract_strided_slice %42 {offsets = [9, 0], sizes = [16, 128], strides = [1, 1]} : vector<25x128xf32> to vector<16x128xf32>
    %c2_46 = arith.constant 2 : index
    %c0_47 = arith.constant 0 : index
    %c0_48 = arith.constant 0 : index
    %55 = vector.load %arg5[%c2_46, %c0_47, %c0_48] : memref<3x128x128xf32, #tpu.memory_space<vmem>>, vector<1x128x128xf32>
    %56 = vector.shape_cast %55 : vector<1x128x128xf32> to vector<128x128xf32>
    %cst_49 = arith.constant dense<0.000000e+00> : vector<16x128xf32>
    %57 = tpu.matmul %54, %56, %cst_49 {dimension_numbers = #tpu.dot_dimension_numbers<[1], [0], [0], [1], [0, 0, 1, 1], [], []>} : vector<16x128xf32>, vector<128x128xf32>, vector<16x128xf32> -> vector<16x128xf32>
    %58 = arith.addf %53, %57 : vector<16x128xf32>
    %c0_50 = arith.constant 0 : index
    %c0_51 = arith.constant 0 : index
    %59 = vector.load %arg6[%c0_50, %c0_51] : memref<1x128xf32, #tpu.memory_space<vmem>>, vector<1x128xf32>
    %60 = vector.broadcast %59 : vector<1x128xf32> to vector<16x128xf32>
    %61 = arith.mulf %58, %60 : vector<16x128xf32>
    %c0_52 = arith.constant 0 : index
    %c0_53 = arith.constant 0 : index
    %62 = vector.load %arg7[%c0_52, %c0_53] : memref<1x128xf32, #tpu.memory_space<vmem>>, vector<1x128xf32>
    %63 = vector.broadcast %62 : vector<1x128xf32> to vector<16x128xf32>
    %64 = arith.addf %61, %63 : vector<16x128xf32>
    %65 = arith.addf %64, %38 : vector<16x128xf32>
    %cst_54 = arith.constant 0.000000e+00 : f32
    %66 = vector.broadcast %cst_54 : f32 to vector<16x128xf32>
    %67 = arith.maximumf %65, %66 : vector<16x128xf32>
    %68 = vector.shape_cast %67 : vector<16x128xf32> to vector<1x16x128xf32>
    %c0_55 = arith.constant 0 : index
    %c0_56 = arith.constant 0 : index
    %c0_57 = arith.constant 0 : index
    %69 = vector.load %arg11[%c0_55, %c0_56, %c0_57] : memref<1x16x128xf32, #tpu.memory_space<vmem>>, vector<1x16x128xf32>
    tpu.vector_store %arg11[%c0_55, %c0_56, %c0_57], %68 {strides = array<i32>} : memref<1x16x128xf32, #tpu.memory_space<vmem>>, vector<1x16x128xf32>,
    return
  }
  func.func @transform_0(%arg0: i32) -> (i32, i32, i32) {
    %c0_i32 = arith.constant 0 : i32
    %c0_i32_0 = arith.constant 0 : i32
    %c0_i32_1 = arith.constant 0 : i32
    return %arg0, %c0_i32, %c0_i32_0 : i32, i32, i32
  }
  func.func @transform_1(%arg0: i32) -> (i32, i32, i32) {
    %c0_i32 = arith.constant 0 : i32
    %c0_i32_0 = arith.constant 0 : i32
    %c0_i32_1 = arith.constant 0 : i32
    %c0_i32_2 = arith.constant 0 : i32
    return %c0_i32, %c0_i32_0, %c0_i32_1 : i32, i32, i32
  }
  func.func @transform_2(%arg0: i32) -> (i32, i32) {
    %c0_i32 = arith.constant 0 : i32
    %c0_i32_0 = arith.constant 0 : i32
    %c0_i32_1 = arith.constant 0 : i32
    return %c0_i32, %c0_i32_0 : i32, i32
  }
  func.func @transform_3(%arg0: i32) -> (i32, i32) {
    %c0_i32 = arith.constant 0 : i32
    %c0_i32_0 = arith.constant 0 : i32
    %c0_i32_1 = arith.constant 0 : i32
    return %c0_i32, %c0_i32_0 : i32, i32
  }
  func.func @transform_4(%arg0: i32) -> (i32, i32, i32) {
    %c0_i32 = arith.constant 0 : i32
    %c0_i32_0 = arith.constant 0 : i32
    %c0_i32_1 = arith.constant 0 : i32
    %c0_i32_2 = arith.constant 0 : i32
    return %c0_i32, %c0_i32_0, %c0_i32_1 : i32, i32, i32
  }
  func.func @transform_5(%arg0: i32) -> (i32, i32) {
    %c0_i32 = arith.constant 0 : i32
    %c0_i32_0 = arith.constant 0 : i32
    %c0_i32_1 = arith.constant 0 : i32
    return %c0_i32, %c0_i32_0 : i32, i32
  }
  func.func @transform_6(%arg0: i32) -> (i32, i32) {
    %c0_i32 = arith.constant 0 : i32
    %c0_i32_0 = arith.constant 0 : i32
    %c0_i32_1 = arith.constant 0 : i32
    return %c0_i32, %c0_i32_0 : i32, i32
  }
  func.func @transform_7(%arg0: i32) -> (i32, i32) {
    %c0_i32 = arith.constant 0 : i32
    %c0_i32_0 = arith.constant 0 : i32
    %c0_i32_1 = arith.constant 0 : i32
    return %c0_i32, %c0_i32_0 : i32, i32
  }
  func.func @transform_8(%arg0: i32) -> (i32, i32) {
    %c0_i32 = arith.constant 0 : i32
    %c0_i32_0 = arith.constant 0 : i32
    %c0_i32_1 = arith.constant 0 : i32
    return %c0_i32, %c0_i32_0 : i32, i32
  }
  func.func @transform_9(%arg0: i32) -> (i32, i32) {
    %c0_i32 = arith.constant 0 : i32
    %c0_i32_0 = arith.constant 0 : i32
    %c0_i32_1 = arith.constant 0 : i32
    return %c0_i32, %c0_i32_0 : i32, i32
  }
  func.func @transform_10(%arg0: i32) -> (i32, i32, i32) {
    %c0_i32 = arith.constant 0 : i32
    %c0_i32_0 = arith.constant 0 : i32
    %c0_i32_1 = arith.constant 0 : i32
    return %arg0, %c0_i32, %c0_i32_0 : i32, i32, i32
  }
}

</mosaic_0001>

<bundles_post_ra>
// kernel: tpu_custom_call.1
= control target key start
LH: loop header
LB: loop body
LE: loop exit
PB: predicated region body
PF: predicated region fallthrough
CT: control target
= control target key end

     0   :  { %s1525_s0 = inlined_call_operand.hbm [shape: f32[2,16,64], index: 0, kind: input, shape index: {}]   ;;  %s1526_s1 = inlined_call_operand.hbm [shape: f32[3,64,128], index: 1, kind: input, shape index: {}]   ;;  %s1527_s2 = inlined_call_operand.vmem [shape: f32[1,128], index: 2, kind: input, shape index: {}]   ;;  %s1528_s3 = inlined_call_operand.vmem [shape: f32[1,128], index: 3, kind: input, shape index: {}]   ;;  %s1529_s4 = inlined_call_operand.hbm [shape: f32[3,128,128], index: 4, kind: input, shape index: {}]   ;;  %s1530_s5 = inlined_call_operand.vmem [shape: f32[1,128], index: 5, kind: input, shape index: {}]   ;;  %s1531_s6 = inlined_call_operand.vmem [shape: f32[1,128], index: 6, kind: input, shape index: {}]   ;;  %s1532_s7 = inlined_call_operand.hbm [shape: f32[64,128], index: 7, kind: input, shape index: {}]   ;;  %s1533_s8 = inlined_call_operand.vmem [shape: f32[1,128], index: 8, kind: input, shape index: {}]   ;;  %s1534_s9 = inlined_call_operand.vmem [shape: f32[1,128], index: 9, kind: input, shape index: {}]   ;;  %s1535_s10 = inlined_call_operand.hbm [shape: f32[2,16,128], index: 10, kind: output, shape index: {}]  }
   0x1   :  { %1538 = sst [smem:[#allocation18_spill]] %s1526_s1 }
   0x2   :  { %1539 = sst [smem:[#allocation19_spill]] %s1529_s4 }
   0x3   :  { %1540 = sst [smem:[#allocation20_spill]] %s1532_s7 }
   0x4   :  { %15 = vsyncpa [#allocation5], 0 }
   0x5   :  { %17 = vsyncpa [#allocation5 + $0x1], 0 }
   0x6   :  { %18 = vsyncpa [#allocation8], 0 }
   0x7   :  { %19 = vsyncpa [#allocation11], 0 }
   0x8   :  { %20 = vsyncpa [#allocation6], 0 }
   0x9   :  { %22 = vsyncpa [#allocation6 + $0x1], 0  ;;  %s1294_s13 = smov 0   ;;  %s1296_s14 = smov 0  }
   0xa   :  { %s1298_s15 = smov 0   ;;  %s1300_s16 = smov 0  }
   0xb LB: > { %s1315_s17 = sadd.s32 4294967295, %s1229_s16   ;;  %s917_s18 = sadd.s32 4294967294, %s1229_s16   ;;  %s1229_s16 = sphi %s1300_s16, %s1558_s16   ;;  %s1225_s15 = sphi %s1298_s15, %s1557_s15   ;;  %s1221_s14 = sphi %s1296_s14, %s1556_s14   ;;  %s1217_s13 = sphi %s1294_s13, %s1555_s13  }
   0xc   : > { %p48_p0 = scmp.ne.s32.totalorder %s1221_s14, %s1217_s13  ;;  %p49_p1 = scmp.eq.s32.totalorder %s1315_s17, 0 }
   0xd   : > { %p261_p2 = scmp.eq.s32.totalorder %s1315_s17, 1  ;;  %p267_p3 = scmp.eq.s32.totalorder %s917_s18, 1 }
   0xe   : > { %p1324_p4 = por %p49_p1, %p48_p0  ;;  %p918_p5 = scmp.ge.s32.totalorder %s1229_s16, 1 }
   0xf   : > { %p1329_p6 = por %p267_p3, %p48_p0  ;;  %p274_p7 = scmp.lt.s32.totalorder %s1229_s16, 3 }
  0x10   : > { %s1543_s1 = sld [smem:[#allocation18_spill]]  ;;  %s1231_s25 = smov [#allocation7]  }
  0x11   : > { %p1337_p8 = pnand %p918_p5, %p274_p7  ;;  %s287_s26 = sshll.u32 %s1231_s25, 4  ;;  %s288_s26 = int_to_ptr.vmem [resolvable:$true] %s287_s26 }
  0x12   : > { %s1546_s4 = sld [smem:[#allocation19_spill]]  ;;  %s1536_s11 = smov 128  }
  0x13   : > { %p963_p9 = pneg %p1337_p8  ;;  %s1537_s12 = smov 8  }
  0x14   : > { %s1234_s18 = smov [#allocation9]   ;;  %s1547_s7 = sld [smem:[#allocation20_spill]] }
  0x15   : > { %p1345_p10 = pnand %p963_p9, %p49_p1  ;;  %s307_s21 = sshll.u32 %s1234_s18, 4  ;;  %s308_s21 = int_to_ptr.vmem [resolvable:$true] %s307_s21 }
  0x16   : > { %s285_s23 = sshll.u32 %s1543_s1, 4  ;;  %s1367_s29 = sadd.s32 1, %s1229_s16   ;;  %s286_s23 = int_to_ptr.hbm [resolvable:$true] %s285_s23 }
  0x17   : > { %966 = dma.hbm_to_vmem [thread:$0]  (!%p1345_p10), %s286_s23, 3072, %s288_s26, [#allocation8], %s1536_s11, %s1536_s11, %s1537_s12  }
  0x18   : > { %s305_s30 = sshll.u32 %s1546_s4, 4  ;;  %s1235_s23 = smov [#allocation10]   ;;  %s306_s30 = int_to_ptr.hbm [resolvable:$true] %s305_s30 }
  0x19   : > { %969 = dma.hbm_to_vmem [thread:$0]  (!%p1345_p10), %s306_s30, 6144, %s308_s21, [#allocation8], %s1536_s11, %s1536_s11, %s1537_s12  }
  0x1a   : > { %s325_s28 = sshll.u32 %s1547_s7, 4  ;;  %s327_s26 = sshll.u32 %s1235_s23, 4  ;;  %s326_s28 = int_to_ptr.hbm [resolvable:$true] %s325_s28  ;;  %s328_s26 = int_to_ptr.vmem [resolvable:$true] %s327_s26 }
  0x1b   : > { %972 = dma.hbm_to_vmem [thread:$0]  (!%p1345_p10), %s326_s28, 1024, %s328_s26, [#allocation11], %s1536_s11, %s1536_s11, %s1537_s12  }
  0x1c   : > { %s32_s18 = ssub.s32 %s1229_s16, %s1367_s29  ;;  %s35_s22 = sadd.s32 1, %s1225_s15 }
  0x1d   : > { %p33_p12 = scmp.eq.s32.totalorder %s32_s18, 0  ;;  %p42_p13 = scmp.ne.s32.totalorder %s1225_s15, %s1221_s14 }
  0x1e   : > { %p43_p0 = scmp.eq.s32.totalorder %s1229_s16, 0  ;;  %p984_p5 = scmp.lt.s32.totalorder %s1229_s16, 2 }
  0x1f   : > { %s1381_s25 = scalar_select %p33_p12, %s1225_s15, %s35_s22  }
  0x20   : > { %p1385_p3 = por %p261_p2, %p42_p13  ;;  %s347_s21 = sand.u32 1, %s1225_s15  }
  0x21   : > { %1548 = sst [smem:[#allocation17_spill]] %s1381_s25  ;;  %s945_s27 = sshll.u32 %s1229_s16, 4 }
  0x22   : > { %p44_p7 = por %p43_p0, %p42_p13  ;;  %s923_s23 = sshll.u32 %s347_s21, 4 }
  0x23   : > { %s356_s28 = scalar_lea.hbm %s1525_s0, %s945_s27  ;;  %s351_s18 = scalar_lea.vmem [#allocation4], %s923_s23 }
  0x24   : > { %s357_s26 = sshll.u32 %s356_s28, 4  ;;  %s359_s11 = sshll.u32 %s351_s18, 4  ;;  %s358_s26 = int_to_ptr.hbm [resolvable:$true] %s357_s26  ;;  %s360_s11 = int_to_ptr.vmem [resolvable:$true] %s359_s11 }
  0x25   : > { %p1395_p9 = pnand %p984_p5, %p44_p7  ;;  %s348_s12 = scalar_lea.sflag [#allocation5], %s347_s21 }
  0x26   : > { %s1125_s7 = sshra.s32 %s358_s26, 4  ;;  %s1132_s27 = scalar_lea.hbm %s1525_s0, 32  ;;  %s1126_s7 = int_to_ptr.hbm [resolvable:$true] %s1125_s7 }
  0x27   : > { %s1127_s25 = scalar_lea.hbm %s1126_s7, 16  ;;  %p1129_p10 = pneg %p1395_p9 }
  0x28   : > { %p1128_p2 = scmp.ne.s32.totalorder %s1126_s7, %s1127_s25  ;;  %p1133_p0 = scmp.lt.s32.totalorder %s1126_s7, %s1525_s0 }
  0x29   : > { %p1134_p5 = scmp.lt.s32.totalorder %s1132_s27, %s1127_s25 }
  0x2a   : > { %p1130_p12 = pnand %p1129_p10, %p1128_p2 }
  0x2b   : > { %p1135_p7 = por %p1134_p5, %p1133_p0 }
  0x2c   : > { %p1131_p13 = pneg %p1130_p12 }
  0x2e   : > { %p1136_p11 = pnand %p1135_p7, %p1131_p13 }
  0x30   : > { %1139 = shalt.err (!%p1136_p11)
}
  0x31   : > { %s1551_s21 = smov 8   ;;  %s1552_s18 = smov 128  }
  0x32   : > { %976 = dma.hbm_to_vmem [thread:$0]  (!%p1395_p9), %s358_s26, 256, %s360_s11, %s348_s12, %s1552_s18, %s1552_s18, %s1551_s21  }
  0x33   : > { %371 = sbr.rel (%p1337_p8) target bundleno = 385 (0x181), region = 60  ;;  %s1415_s1 = sand.u32 (!%p1337_p8), 1, %s1221_s14  }
  0x34   : > { %s927_s7 = sshll.u32 (!%p1337_p8), %s1415_s1, 4  ;;  %s374_s25 = scalar_lea.sflag (!%p1337_p8), [#allocation5], %s1415_s1 }
  0x35   : > { %s1421_s4 = scalar_lea.vmem (!%p1337_p8), [#allocation4], %s927_s7 }
  0x38   : > { %1200 = dma.done.wait (%p1324_p4), %s374_s25, 256  }
  0x39   : > { %1202 = vsyncadd (%p1324_p4), %s374_s25, 4294967040 }
  0x3a   : > { %1204 = dma.done.wait (%p49_p1), [#allocation8], 9216  }
  0x3b   : > { %1206 = vsyncadd (%p49_p1), [#allocation8], 4294958080 }
  0x3c   : > { %1208 = dma.done.wait (%p49_p1), [#allocation11], 1024  }
  0x3d   : > { %1210 = vsyncadd (%p49_p1), [#allocation11], 4294966272  ;;  %vm432_vm0 = vcmask 523264   ;;  %v1236_v0 = vmov 0.0   ;;  %vm436_vm1 = vcmask 516096   ;;  %v460_v1 = vld [vmem:[#allocation7 + $0x78] sm:$0xff] }
  0x3e   : > { %434 = vst.msk [vmem:[#allocation2 + $0x8] sm:$0xff] %vm432_vm0, %v1236_v0  ;;  %v459_v2 = vld [vmem:[#allocation7 + $0x70] sm:$0xff]  ;;  %v532_v3 = vld [vmem:[#allocation7 + $0xb8] sm:$0xff]  ;;  %475 = vmatpush.msra.mxu3 %v460_v1  ;;  %v458_v5 = vld [vmem:[#allocation7 + $0x68] sm:$0xff]  ;;  %vm534_vm2 = vcmask 1046528   ;;  %vm491_vm3 = vcmask 1040384  }
  0x3f   : > { %433 = vst.msk [vmem:[#allocation2] sm:$0xff] %vm432_vm0, %v1236_v0  ;;  %552 = vmatpush.msra.mxu2 %v532_v3  ;;  %v531_v4 = vld [vmem:[#allocation7 + $0xb0] sm:$0xff]  ;;  %v451_v6 = vld [vmem:[#allocation7 + $0x38] sm:$0xff]  ;;  %v530_v7 = vld [vmem:[#allocation7 + $0xa8] sm:$0xff]  ;;  %s429_s12 = scalar_lea.vmem [#allocation12], %s927_s7  ;;  %s1175_s21 = scalar_lea.hbm %s1535_s10, 32 }
  0x40   : > { %435 = vst.msk [vmem:[#allocation2 + $0x10] sm:$0xff] %vm432_vm0, %v1236_v0  ;;  %476 = vmatpush.msra.mxu3 %v459_v2  ;;  %v450_v8 = vld [vmem:[#allocation7 + $0x30] sm:$0xff]  ;;  %v457_v9 = vld [vmem:[#allocation7 + $0x60] sm:$0xff]  ;;  %509 = vmatpush.msra.mxu1 %v451_v6  ;;  %v449_v11 = vld [vmem:[#allocation7 + $0x28] sm:$0xff]  ;;  %s812_s26 = sshll.u32 %s429_s12, 4  ;;  %s813_s26 = int_to_ptr.vmem [resolvable:$true] %s812_s26 }
  0x41   : > { %635 = vst [vmem:[#allocation3 + $0x8] sm:$0x1] %v1236_v0  ;;  %553 = vmatpush.msra.mxu2 %v531_v4  ;;  %v529_v10 = vld [vmem:[#allocation7 + $0xa0] sm:$0xff]  ;;  %v456_v12 = vld [vmem:[#allocation7 + $0x58] sm:$0xff]  ;;  %v455_v17 = vld [vmem:[#allocation7 + $0x50] sm:$0xff] }
  0x42   : > { %437 = vst.msk [vmem:[#allocation2 + $0x18] sm:$0x1] %vm436_vm1, %v1236_v0  ;;  %477 = vmatpush.msra.mxu3 %v458_v5  ;;  %510 = vmatpush.msra.mxu1 %v450_v8  ;;  %v528_v13 = vld [vmem:[#allocation7 + $0x98] sm:$0xff]  ;;  %v1444_v14 = vld [vmem:[%s1421_s4] sm:$0xff]  ;;  %v454_v22 = vld [vmem:[#allocation7 + $0x48] sm:$0xff] }
  0x43   : > { %554 = vmatpush.msra.mxu2 %v530_v7  ;;  %v448_v15 = vld [vmem:[#allocation7 + $0x20] sm:$0xff]  ;;  %438 = vst.msk [vmem:[#allocation2 + $0x8] sm:$0xff] %vm432_vm0, %v1444_v14  ;;  %v1449_v16 = vld [vmem:[%s1421_s4 + $0x8] sm:$0xff]  ;;  %v527_v18 = vld [vmem:[#allocation7 + $0x90] sm:$0xff]  ;;  %s946_s4 = sshll.u32 %s1315_s17, 4  ;;  %s800_s17 = scalar_lea.sflag [#allocation6], %s1415_s1 }
  0x44   : > { %478 = vmatpush.msra.mxu3 %v457_v9  ;;  %511 = vmatpush.msra.mxu1 %v449_v11  ;;  %439 = vst.msk [vmem:[#allocation2 + $0x10] sm:$0xff] %vm432_vm0, %v1449_v16  ;;  %v447_v19 = vld [vmem:[#allocation7 + $0x18] sm:$0xff]  ;;  %v673_v21 = vld [vmem:[#allocation9 + $0xf0] sm:$0xff]  ;;  %v526_v23 = vld [vmem:[#allocation7 + $0x88] sm:$0xff]  ;;  %s811_s11 = scalar_lea.hbm %s1535_s10, %s946_s4 }
  0x45   : > { %555 = vmatpush.msra.mxu2 %v529_v10  ;;  %v674_v20 = vld [vmem:[#allocation9 + $0xf8] sm:$0xff]  ;;  %v453_v25 = vld [vmem:[#allocation7 + $0x40] sm:$0xff]  ;;  %v446_v26 = vld [vmem:[#allocation7 + $0x10] sm:$0xff]  ;;  %s814_s22 = sshll.u32 %s811_s11, 4  ;;  %s815_s22 = int_to_ptr.hbm [resolvable:$true] %s814_s22 }
  0x46   : > { %479 = vmatpush.msra.mxu3 %v456_v12  ;;  %512 = vmatpush.msra.mxu1 %v448_v15  ;;  %v440_v24 = vld [vmem:[#allocation2] sm:$0xff]  ;;  %v672_v27 = vld [vmem:[#allocation9 + $0xe8] sm:$0xff]  ;;  %v747_v32 = vld [vmem:[#allocation9 + $0x178] sm:$0xff]  ;;  %s1169_s27 = sshra.s32 %s815_s22, 4  ;;  %s1170_s27 = int_to_ptr.hbm [resolvable:$true] %s1169_s27 }
  0x47   : > { %556 = vmatpush.msra.mxu2 %v528_v13  ;;  %675 = vmatpush.msra.mxu0 %v674_v20  ;;  %v525_v28 = vld [vmem:[#allocation7 + $0x80] sm:$0xff]  ;;  %v445_v29 = vld [vmem:[#allocation7 + $0x8] sm:$0xff]  ;;  %v492_v31 = vrot.slane %v440_v24, 7  ;;  %v657_v41 = vld [vmem:[#allocation9 + $0x78] sm:$0xff]  ;;  %s1171_s23 = scalar_lea.hbm %s1170_s27, 16  ;;  %p1176_p11 = scmp.lt.s32.totalorder %s1170_s27, %s1535_s10 }
  0x48   : > { %480 = vmatpush.msra.mxu3 %v455_v17  ;;  %513 = vmatpush.msra.mxu1 %v447_v19  ;;  %v671_v30 = vld [vmem:[#allocation9 + $0xe0] sm:$0xff]  ;;  %v670_v42 = vld [vmem:[#allocation9 + $0xd8] sm:$0xff]  ;;  %v656_v44 = vld [vmem:[#allocation9 + $0x70] sm:$0xff]  ;;  %p1172_p1 = scmp.ne.s32.totalorder %s1170_s27, %s1171_s23  ;;  %p1177_p9 = scmp.lt.s32.totalorder %s1175_s21, %s1171_s23 }
  0x49   : > { %557 = vmatpush.msra.mxu2 %v527_v18  ;;  %676 = vmatpush.msra.mxu0 %v673_v21  ;;  %v444_v37 = vld [vmem:[#allocation7] sm:$0xff]  ;;  %v443_v40 = vld [vmem:[#allocation2 + $0x18] sm:$0x1]  ;;  %v669_v45 = vld [vmem:[#allocation9 + $0xd0] sm:$0xff] }
  0x4a   : > { %481 = vmatpush.msra.mxu3 %v454_v22  ;;  %v441_v33 = vld [vmem:[#allocation2 + $0x8] sm:$0xff]  ;;  %514 = vmatpush.msra.mxu1 %v446_v26  ;;  %v538_v46 = vrot.slane %v443_v40, 1  ;;  %v654_v49 = vld [vmem:[#allocation9 + $0x60] sm:$0xff]  ;;  %v653_v52 = vld [vmem:[#allocation9 + $0x58] sm:$0xff]  ;;  %p1173_p4 = pnand %p1172_p1, %p1385_p3  ;;  %p1178_p2 = por %p1177_p9, %p1176_p11 }
  0x4b   : > { %558 = vmatpush.msra.mxu2 %v526_v23  ;;  %677 = vmatpush.msra.mxu0 %v672_v27  ;;  %v493_v34 = vrot.slane %v441_v33, 7  ;;  %v535_v35 = vrot.slane %v441_v33, 1  ;;  %v442_v36 = vld [vmem:[#allocation2 + $0x10] sm:$0xff]  ;;  %v655_v48 = vld [vmem:[#allocation9 + $0x68] sm:$0xff]  ;;  %v667_v56 = vld [vmem:[#allocation9 + $0xc0] sm:$0xff] }
  0x4c   : > { %482 = vmatpush.msra.mxu3 %v453_v25  ;;  %v536_v38 = vrot.slane %v442_v36, 1  ;;  %515 = vmatpush.msra.mxu1 %v445_v29  ;;  %v495_v47 = vrot.slane %v442_v36, 7  ;;  %v668_v53 = vld [vmem:[#allocation9 + $0xc8] sm:$0xff]  ;;  %v652_v54 = vld [vmem:[#allocation9 + $0x50] sm:$0xff]  ;;  %v666_v59 = vld [vmem:[#allocation9 + $0xb8] sm:$0xff]  ;;  %p1174_p8 = pneg %p1173_p4 }
  0x4d   : > { %559 = vmatpush.msra.mxu2 %v525_v28  ;;  %932 = vmatmul.msk.f32.vlgmr.msra.gmra.mxu3 %vm432_vm0, %v441_v33  ;;  %v494_v39 = vsel %vm491_vm3, %v492_v31, %v493_v34  ;;  %v746_v55 = vld [vmem:[#allocation9 + $0x170] sm:$0xff]  ;;  %v651_v57 = vld [vmem:[#allocation9 + $0x48] sm:$0xff]  ;;  %v650_v60 = vld [vmem:[#allocation9 + $0x40] sm:$0xff] }
  0x4e   : > { %678 = vmatpush.msra.mxu0 %v671_v30  ;;  %v537_v43 = vsel %vm534_vm2, %v535_v35, %v536_v38  ;;  %516 = vmatpush.msra.mxu1 %v444_v37  ;;  %v539_v50 = vsel %vm534_vm2, %v536_v38, %v538_v46  ;;  %v496_v51 = vsel %vm491_vm3, %v493_v34, %v495_v47  ;;  %v745_v58 = vld [vmem:[#allocation9 + $0x168] sm:$0xff]  ;;  %v744_v61 = vld [vmem:[#allocation9 + $0x160] sm:$0xff]  ;;  %v665_v62 = vld [vmem:[#allocation9 + $0xb0] sm:$0xff]  ;;  %p1179_p10 = pnand %p1178_p2, %p1174_p8 }
  0x4f   : > { %756 = vmatpush.msrb.mxu2 %v747_v32  ;;  %934 = vmatmul.msk.f32.vlgmr.msra.gmra.mxu1 %vm432_vm0, %v494_v39  ;;  %v649_v63 = vld [vmem:[#allocation9 + $0x38] sm:$0xff]  ;;  %v664_v2 = vld [vmem:[#allocation9 + $0xa8] sm:$0xff]  ;;  %v648_v3 = vld [vmem:[#allocation9 + $0x30] sm:$0xff] }
  0x50   : > { %936 = vmatmul.msk.f32.vlgmr.msra.gmra.mxu2 %vm432_vm0, %v537_v43  ;;  %708 = vmatpush.msrb.mxu1 %v657_v41  ;;  %v743_v1 = vld [vmem:[#allocation9 + $0x158] sm:$0xff]  ;;  %v742_v4 = vld [vmem:[#allocation9 + $0x150] sm:$0xff]  ;;  %v663_v5 = vld [vmem:[#allocation9 + $0xa0] sm:$0xff] }
  0x51   : > { %679 = vmatpush.msra.mxu0 %v670_v42  ;;  %757 = vmatpush.msrb.mxu2 %v746_v55  ;;  %v647_v6 = vld [vmem:[#allocation9 + $0x28] sm:$0xff]  ;;  %v662_v8 = vld [vmem:[#allocation9 + $0x98] sm:$0xff]  ;;  %v646_v9 = vld [vmem:[#allocation9 + $0x20] sm:$0xff] }
  0x52   : > { %709 = vmatpush.msrb.mxu1 %v656_v44  ;;  %v741_v7 = vld [vmem:[#allocation9 + $0x148] sm:$0xff]  ;;  %v740_v10 = vld [vmem:[#allocation9 + $0x140] sm:$0xff]  ;;  %v661_v11 = vld [vmem:[#allocation9 + $0x90] sm:$0xff] }
  0x53   : > { %680 = vmatpush.msra.mxu0 %v669_v45  ;;  %758 = vmatpush.msrb.mxu2 %v745_v58  ;;  %v645_v12 = vld [vmem:[#allocation9 + $0x18] sm:$0xff]  ;;  %v660_v15 = vld [vmem:[#allocation9 + $0x88] sm:$0xff]  ;;  %v644_v18 = vld [vmem:[#allocation9 + $0x10] sm:$0xff] }
  0x54   : > { %710 = vmatpush.msrb.mxu1 %v655_v48  ;;  %v739_v13 = vld [vmem:[#allocation9 + $0x138] sm:$0xff]  ;;  %v738_v19 = vld [vmem:[#allocation9 + $0x130] sm:$0xff]  ;;  %v659_v20 = vld [vmem:[#allocation9 + $0x80] sm:$0xff]  ;;  %v701_v48 = vrot.slane %v1236_v0, 7 }
  0x55   : > { %933 = vmatmul.msk.f32.gmra.mxu3 %vm432_vm0, %v442_v36  ;;  %681 = vmatpush.msra.mxu0 %v668_v53  ;;  %v590_v17 = vld [vmem:[#allocation10 + $0x38] sm:$0xff]  ;;  %v589_v21 = vld [vmem:[#allocation10 + $0x30] sm:$0xff]  ;;  %v643_v22 = vld [vmem:[#allocation9 + $0x8] sm:$0xff] }
  0x56   : > { %711 = vmatpush.msrb.mxu1 %v654_v49  ;;  %759 = vmatpush.msrb.mxu2 %v744_v61  ;;  %v737_v23 = vld [vmem:[#allocation9 + $0x128] sm:$0xff]  ;;  %v642_v25 = vld [vmem:[#allocation9] sm:$0xff]  ;;  %v735_v28 = vld [vmem:[#allocation9 + $0x118] sm:$0xff] }
  0x57   : > { %935 = vmatmul.msk.f32.gmra.mxu1 %vm432_vm0, %v496_v51  ;;  %682 = vmatpush.msra.mxu0 %v667_v56  ;;  %v588_v24 = vld [vmem:[#allocation10 + $0x28] sm:$0xff]  ;;  %v736_v26 = vld [vmem:[#allocation9 + $0x120] sm:$0xff]  ;;  %v586_v29 = vld [vmem:[#allocation10 + $0x18] sm:$0xff] }
  0x58   : > { %937 = vmatmul.msk.f32.gmra.mxu2 %vm432_vm0, %v539_v50  ;;  %712 = vmatpush.msrb.mxu1 %v653_v52  ;;  %v587_v27 = vld [vmem:[#allocation10 + $0x20] sm:$0xff]  ;;  %v734_v30 = vld [vmem:[#allocation9 + $0x110] sm:$0xff]  ;;  %v733_v32 = vld [vmem:[#allocation9 + $0x108] sm:$0xff] }
  0x59   : > { %683 = vmatpush.msra.mxu0 %v666_v59  ;;  %760 = vmatpush.msrb.mxu2 %v743_v1  ;;  %v585_v31 = vld [vmem:[#allocation10 + $0x10] sm:$0xff]  ;;  %v584_v33 = vld [vmem:[#allocation10 + $0x8] sm:$0xff]  ;;  %v732_v34 = vld [vmem:[#allocation9 + $0x100] sm:$0xff] }
  0x5a   : > { %713 = vmatpush.msrb.mxu1 %v652_v54  ;;  %605 = vmatpush.msrb.mxu3 %v590_v17  ;;  %v583_v35 = vld [vmem:[#allocation10] sm:$0xff]  ;;  %v641_v0 = vld [vmem:[#allocation3 + $0x8] sm:$0x1] }
  0x5b   : > { %684 = vmatpush.msra.mxu0 %v665_v62  ;;  %761 = vmatpush.msrb.mxu2 %v742_v4  ;;  %v1029_v39 = vld [vmem:[%s1527_s2] ss:$0 sm:$0xff] }
  0x5c   : > { %714 = vmatpush.msrb.mxu1 %v651_v57  ;;  %606 = vmatpush.msrb.mxu3 %v589_v21  ;;  %v1030_v42 = vld [vmem:[%s1528_s3] ss:$0 sm:$0xff] }
  0x5d   : > { %685 = vmatpush.msra.mxu0 %v664_v2  ;;  %762 = vmatpush.msrb.mxu2 %v741_v7  ;;  %v1033_v1 = vld [vmem:[%s1533_s8] ss:$0 sm:$0xff] }
  0x5e   : > { %715 = vmatpush.msrb.mxu1 %v650_v60  ;;  %607 = vmatpush.msrb.mxu3 %v588_v24  ;;  %v752_v60 = vrot.slane %v641_v0, 1  ;;  %v1031_v4 = vld [vmem:[%s1530_s5] ss:$0 sm:$0xff] }
  0x5f   : > { %686 = vmatpush.msra.mxu0 %v663_v5  ;;  %763 = vmatpush.msrb.mxu2 %v740_v10 }
  0x60   : > { %716 = vmatpush.msrb.mxu1 %v649_v63  ;;  %608 = vmatpush.msrb.mxu3 %v587_v27 }
  0x61   : > { %687 = vmatpush.msra.mxu0 %v662_v8  ;;  %764 = vmatpush.msrb.mxu2 %v739_v13 }
  0x62   : > { %717 = vmatpush.msrb.mxu1 %v648_v3  ;;  %609 = vmatpush.msrb.mxu3 %v586_v29 }
  0x63   : > { %688 = vmatpush.msra.mxu0 %v661_v11  ;;  %765 = vmatpush.msrb.mxu2 %v738_v19 }
  0x64   : > { %718 = vmatpush.msrb.mxu1 %v647_v6  ;;  %610 = vmatpush.msrb.mxu3 %v585_v31  ;;  %v1034_v6 = vld [vmem:[%s1534_s9] ss:$0 sm:$0xff] }
  0x65   : > { %689 = vmatpush.msra.mxu0 %v660_v15  ;;  %766 = vmatpush.msrb.mxu2 %v737_v23 }
  0x66   : > { %719 = vmatpush.msrb.mxu1 %v646_v9  ;;  %611 = vmatpush.msrb.mxu3 %v584_v33  ;;  %v1032_v9 = vld [vmem:[%s1531_s6] ss:$0 sm:$0xff] }
  0x67   : > { %690 = vmatpush.msra.mxu0 %v659_v20  ;;  %767 = vmatpush.msrb.mxu2 %v736_v26 }
  0x68   : > { %720 = vmatpush.msrb.mxu1 %v645_v12  ;;  %612 = vmatpush.msrb.mxu3 %v583_v35 }
  0x69   : > { %768 = vmatpush.msrb.mxu2 %v735_v28  ;;  %938 = vmatmul.msk.f32.vlgmr.msrb.gmra.mxu3 %vm432_vm0, %v1444_v14 }
  0x6a   : > { %721 = vmatpush.msrb.mxu1 %v644_v18 }
  0x6b   : > { %769 = vmatpush.msrb.mxu2 %v734_v30 }
  0x6c   : > { %722 = vmatpush.msrb.mxu1 %v643_v22 }
  0x6d   : > { %770 = vmatpush.msrb.mxu2 %v733_v32 }
  0x6e   : > { %723 = vmatpush.msrb.mxu1 %v642_v25 }
  0x6f   : > { %771 = vmatpush.msrb.mxu2 %v732_v34 }
  0x71   : > { %939 = vmatmul.msk.f32.gmra.mxu3 %vm432_vm0, %v1449_v16 }
  0xcc   : > { %v518_v36 = vpop.f32.mrf.mxu1 }
  0xd0   : > { %v484_v37 = vpop.f32.mrf.mxu3 }
  0xd1   : > { %v519_v38 = vadd.f32 %v518_v36, %v484_v37 }
  0xd3   : > { %v561_v40 = vpop.f32.mrf.mxu2 }
  0xd4   : > { %v567_v41 = vadd.f32 %v561_v40, %v519_v38  ;;  %v521_v44 = vpop.f32.mrf.mxu1 }
  0xd6   : > { %v573_v43 = vmul.f32 %v1029_v39, %v567_v41 }
  0xd8   : > { %v579_v45 = vadd.f32 %v1030_v42, %v573_v43  ;;  %v487_v14 = vpop.f32.mrf.mxu3 }
  0xd9   : > { %v522_v46 = vadd.f32 %v521_v44, %v487_v14 }
  0xda   : > { %v581_v47 = vmax.f32 %v579_v45, 0.0 }
  0xdb   : > { %v564_v49 = vpop.f32.mrf.mxu2 }
  0xdc   : > { %v568_v16 = vadd.f32 %v564_v49, %v522_v46  ;;  %691 = vmatmul.f32.vlgmr.msra.gmra.mxu0 %v581_v47  ;;  %v702_v50 = vrot.slane %v581_v47, 7  ;;  %v749_v55 = vrot.slane %v581_v47, 1 }
  0xde   : > { %v574_v51 = vmul.f32 %v1029_v39, %v568_v16  ;;  %v703_v52 = vsel %vm491_vm3, %v701_v48, %v702_v50 }
  0xdf   : > { %724 = vmatmul.f32.vlgmr.msrb.gmra.mxu1 %v703_v52 }
  0xe0   : > { %v580_v53 = vadd.f32 %v1030_v42, %v574_v51 }
  0xe2   : > { %v582_v54 = vmax.f32 %v580_v53, 0.0 }
  0xe4   : > { %694 = vmatmul.f32.gmra.mxu0 %v582_v54  ;;  %v704_v56 = vrot.slane %v582_v54, 7  ;;  %v750_v57 = vrot.slane %v582_v54, 1 }
  0xe6   : > { %v705_v58 = vsel %vm491_vm3, %v702_v50, %v704_v56  ;;  %v751_v59 = vsel %vm534_vm2, %v749_v55, %v750_v57  ;;  %v753_v61 = vsel %vm534_vm2, %v750_v57, %v752_v60 }
  0xe7   : > { %727 = vmatmul.f32.gmra.mxu1 %v705_v58  ;;  %772 = vmatmul.f32.vlgmr.msrb.gmra.mxu2 %v751_v59 }
  0xec   : > { %v614_v63 = vpop.f32.mrf.mxu3 }
  0xed   : > { %v624_v5 = vmul.f32 %v1033_v1, %v614_v63 }
  0xef   : > { %775 = vmatmul.f32.gmra.mxu2 %v753_v61  ;;  %v630_v11 = vadd.f32 %v1034_v6, %v624_v5 }
  0xf4   : > { %v617_v13 = vpop.f32.mrf.mxu3 }
  0xf5   : > { %v625_v20 = vmul.f32 %v1033_v1, %v617_v13 }
  0xf7   : > { %v631_v25 = vadd.f32 %v1034_v6, %v625_v20 }
 0x159   : > { %v692_v2 = vpop.f32.mrf.mxu0 }
 0x15c   : > { %v725_v62 = vpop.f32.mrf.mxu1 }
 0x15d   : > { %v726_v3 = vadd.f32 %v725_v62, %v692_v2 }
 0x161   : > { %v695_v17 = vpop.f32.mrf.mxu0 }
 0x164   : > { %v728_v12 = vpop.f32.mrf.mxu1 }
 0x165   : > { %v729_v18 = vadd.f32 %v728_v12, %v695_v17 }
 0x16a   : > { %v773_v7 = vpop.f32.mrf.mxu2 }
 0x16b   : > { %v779_v8 = vadd.f32 %v773_v7, %v726_v3 }
 0x16d   : > { %v785_v10 = vmul.f32 %v1031_v4, %v779_v8 }
 0x16f   : > { %v791_v15 = vadd.f32 %v1032_v9, %v785_v10 }
 0x171   : > { %v793_v19 = vadd.f32 %v791_v15, %v630_v11 }
 0x172   : > { %v776_v21 = vpop.f32.mrf.mxu2 }
 0x173   : > { %v795_v22 = vmax.f32 %v793_v19, 0.0  ;;  %v780_v23 = vadd.f32 %v776_v21, %v729_v18 }
 0x175   : > { %797 = vst [vmem:[%s429_s12] sm:$0xff] %v795_v22  ;;  %v786_v24 = vmul.f32 %v1031_v4, %v780_v23 }
 0x177   : > { %v792_v26 = vadd.f32 %v1032_v9, %v786_v24 }
 0x179   : > { %v794_v27 = vadd.f32 %v792_v26, %v631_v25 }
 0x17b   : > { %v796_v28 = vmax.f32 %v794_v27, 0.0 }
 0x17d   : > { %798 = vst [vmem:[%s429_s12 + $0x8] sm:$0xff] %v796_v28 }
 0x17e   : > { %1182 = shalt.err (!%p1179_p10)
}
 0x17f   : > { %s1237_s1 = smov 128   ;;  %s1238_s4 = smov 8  }
 0x180   : > { %961 = dma.vmem_to_hbm [thread:$0]  (%p1385_p3), %s813_s26, 256, %s815_s22, %s800_s17, %s1237_s1, %s1237_s1, %s1238_s4  }
 0x181 PF: > { %s829_s19 = sand.u32 1, %s1217_s13   ;;  %p1553_p12 = scmp.ge.s32.totalorder %s1229_s16, 2 }
 0x182   : > { %s830_s24 = scalar_lea.sflag [#allocation6], %s829_s19 }
 0x183   : > { %p978_p13 = pnand %p1553_p12, %p1329_p6 }
 0x185   : > { %p979_p0 = pneg %p978_p13 }
 0x187   : > { %1212 = dma.done.wait (%p979_p0), %s830_s24, 256  }
 0x188   : > { %1214 = vsyncadd (%p979_p0), %s830_s24, 4294967040  ;;  %s1554_s11 = sld [smem:[#allocation17_spill]]  ;;  %p25_p5 = scmp.ge.s32.totalorder %s1367_s29, 4  }
 0x189   : > { %s1555_s13 = smov %s1221_s14  ;;  %s1556_s14 = smov %s1225_s15 }
 0x18a   : > { %s1558_s16 = smov %s1367_s29  ;;  %27 = sbr.rel (!%p25_p5) target bundleno = 11 (0xb), region = 121 }
 0x18e   : > { %s1557_s15 = smov %s1554_s11 }
 0x18f   :  { %836 = vsyncpa [#allocation5], 1 }
 0x190   :  { %838 = vsyncpa [#allocation5 + $0x1], 1 }
 0x191   :  { %839 = vsyncpa [#allocation8], 1 }
 0x192   :  { %840 = vsyncpa [#allocation11], 1 }
 0x193   :  { %841 = vsyncpa [#allocation6], 1 }
 0x194   :  { %843 = vsyncpa [#allocation6 + $0x1], 1 }

</bundles_post_ra>
